<compile_context>
chip_gen: v7x
topology: tpu7x:2x2x1
jax: 0.10.0
libtpu: 0.0.40
codegen_flags: <defaults>
</compile_context>

<pallas_src>
import functools
import math

import jax
import jax.numpy as jnp
from jax.experimental import pallas as pl
from jax.experimental.pallas import tpu as pltpu


def _round_up(x, m):
    return ((x + m - 1) // m) * m


def _sfs2mesh_kernel(sfs_ref, mesh_ref, y_ref, sse_ref, *, w, b,
                     block_rows, lanes):
    """Processes one (block_rows, lanes) slab of the flattened images.

    sfs_ref  : VMEM (block_rows, lanes)  input tile
    mesh_ref : VMEM (block_rows, lanes)  target tile
    y_ref    : VMEM (block_rows, lanes)  affine output tile
    sse_ref  : VMEM (1, 8, 128)          this block's partial sum of sq. errors
    """
    x = sfs_ref[...].astype(jnp.float32)
    y = w * x + b
    y_ref[...] = y.astype(y_ref.dtype)

    d = y - mesh_ref[...].astype(jnp.float32)
    dd = d * d

    # Fold to a vreg-shaped (8, 128) partial using only vreg-aligned VPU adds:
    #  1) fold sublane groups of 8 rows,
    part = dd.reshape(block_rows // 8, 8, lanes).sum(axis=0)        # (8, lanes)
    #  2) fold 128-lane groups with static lane-aligned slices.
    acc = part[:, 0:128]
    for g in range(1, lanes // 128):
        acc = acc + part[:, g * 128:(g + 1) * 128]

    sse_ref[...] = acc[None]                                        # (1, 8, 128)


def sfs2mesh_forward(sfs_img, mesh_img, *, w=1.0, b=0.0,
                     lane_tile=1024, target_block_bytes=4 * 1024 * 1024):
    """Pallas implementation of SFS2Mesh.forward.

    Returns (loss, sfs_solved) with sfs_solved in sfs_img's original shape.
    w and b are treated as compile-time scalars (as in the module's __init__).
    """
    assert sfs_img.shape == mesh_img.shape
    initial_shape = sfs_img.shape
    dtype = sfs_img.dtype
    itemsize = jnp.dtype(dtype).itemsize
    n = int(math.prod(initial_shape))
    w = float(w)
    b = float(b)

    # dtype-aware minimum sublane multiple for the second-minor block dim.
    sublane = {4: 8, 2: 16, 1: 32}.get(itemsize, 8)

    # Lane-dense layout: flatten and tile as (rows, L), L a multiple of 128.
    L = max(128, min(_round_up(lane_tile, 128), _round_up(n, 128)))
    rows = -(-n // L)

    # Row block sized so each stream moves ~target_block_bytes per grid step
    # (keeps bytes/step constant across dtypes -> same roofline fraction).
    r_target = max(sublane, target_block_bytes // (L * itemsize))
    r_blk = min(_round_up(r_target, sublane), _round_up(rows, sublane))

    # v7x megacore: ensure the parallel grid axis has >= 2 blocks when there is
    # enough data, so both TensorCores get work (harmless on v5e/v6e).
    while (_round_up(rows, r_blk) // r_blk) < 2 and r_blk > sublane:
        r_blk = max(sublane, _round_up(r_blk // 2, sublane))

    rows_p = _round_up(rows, r_blk)
    num_blocks = rows_p // r_blk
    pad = rows_p * L - n

    sfs_flat = sfs_img.reshape(-1)
    mesh_flat = mesh_img.reshape(-1)
    if pad:
        # Pad sfs with 0 and mesh with b: padded elements give
        # d = (w*0 + b) - b = 0 and contribute nothing to the SSE, so no
        # in-kernel validity mask is needed.
        sfs_flat = jnp.pad(sfs_flat, (0, pad))
        mesh_flat = jnp.pad(mesh_flat, (0, pad), constant_values=b)
    sfs_p = sfs_flat.reshape(rows_p, L)
    mesh_p = mesh_flat.reshape(rows_p, L)

    kernel = functools.partial(
        _sfs2mesh_kernel, w=w, b=b, block_rows=r_blk, lanes=L)

    # VMEM budget: 3 streams x 2 pipeline buffers x block (+ tiny partials),
    # with headroom, clamped to stay well inside v7x's 64 MiB per-TC VMEM.
    block_bytes = r_blk * L * itemsize
    try:
        info = pltpu.get_tpu_info()
        vmem_cap = int(getattr(info, "vmem_capacity_bytes", 64 * 1024 * 1024))
    except Exception:
        vmem_cap = 64 * 1024 * 1024
    vmem_limit = int(min(
        max(32 * 1024 * 1024, 8 * block_bytes),
        48 * 1024 * 1024,
        max(16 * 1024 * 1024, vmem_cap - 16 * 1024 * 1024),
    ))

    y_p, sse = pl.pallas_call(
        kernel,
        out_shape=(
            jax.ShapeDtypeStruct((rows_p, L), dtype),                 # affine output
            jax.ShapeDtypeStruct((num_blocks, 8, 128), jnp.float32),  # SSE partials
        ),
        grid=(num_blocks,),
        in_specs=[
            pl.BlockSpec((r_blk, L), lambda j: (j, 0)),      # sfs tile
            pl.BlockSpec((r_blk, L), lambda j: (j, 0)),      # mesh tile
        ],
        out_specs=(
            pl.BlockSpec((r_blk, L), lambda j: (j, 0)),      # y tile
            pl.BlockSpec((1, 8, 128), lambda j: (j, 0, 0)),  # per-block SSE partial
        ),
        compiler_params=pltpu.CompilerParams(
            # Each block writes its own output tile and SSE partial -> the grid
            # axis is safely parallel (sharded across v7x TensorCores).
            dimension_semantics=("parallel",),
            vmem_limit_bytes=vmem_limit,
        ),
    )(sfs_p, mesh_p)

    loss = jnp.sum(sse) / jnp.float32(n)
    if pad:
        sfs_solved = y_p.reshape(-1)[:n].reshape(initial_shape)
    else:
        sfs_solved = y_p.reshape(initial_shape)
    return loss, sfs_solved


def _reference(sfs_img, mesh_img, w, b):
    y = w * sfs_img + b
    n0 = sfs_img.shape[0]
    loss = jnp.mean(
        (y.reshape(n0, -1).astype(jnp.float32)
         - mesh_img.reshape(n0, -1).astype(jnp.float32)) ** 2)
    return loss, y


if __name__ == "__main__":
    # Module's __init__ uses w=1.0, b=0.0; use non-trivial values so the
    # correctness check is meaningful.
    W_INIT = 1.25
    B_INIT = 0.1

    key = jax.random.PRNGKey(0)
    k1, k2, k3, k4, k5, k6 = jax.random.split(key, 6)

    # Case 1: the canonical small NCHW shape.
    sfs_img = jax.random.normal(k1, (2, 4, 16, 16), dtype=jnp.float32)
    mesh_img = jax.random.normal(k2, (2, 4, 16, 16), dtype=jnp.float32)

    loss, sfs_solved = sfs2mesh_forward(sfs_img, mesh_img, w=W_INIT, b=B_INIT)
    jax.block_until_ready((loss, sfs_solved))

    ref_loss, ref_y = _reference(sfs_img, mesh_img, W_INIT, B_INIT)
    assert sfs_solved.shape == sfs_img.shape
    assert sfs_solved.dtype == sfs_img.dtype
    assert jnp.allclose(sfs_solved, ref_y, atol=1e-5, rtol=1e-5)
    assert jnp.allclose(loss, ref_loss, atol=1e-5, rtol=1e-5)

    # Case 2: awkward (non-128-divisible) shape -> exercises pad-with-b path.
    sfs2 = jax.random.normal(k3, (2, 3, 17, 19), dtype=jnp.float32)
    mesh2 = jax.random.normal(k4, (2, 3, 17, 19), dtype=jnp.float32)

    loss2, y2 = sfs2mesh_forward(sfs2, mesh2, w=W_INIT, b=B_INIT)
    jax.block_until_ready((loss2, y2))

    ref_loss2, ref_y2 = _reference(sfs2, mesh2, W_INIT, B_INIT)
    assert y2.shape == sfs2.shape
    assert jnp.allclose(y2, ref_y2, atol=1e-5, rtol=1e-5)
    assert jnp.allclose(loss2, ref_loss2, atol=1e-5, rtol=1e-5)

    # Case 3: divisible shape -> exercises the copy-free, multi-block path
    # (parallel grid axis with >= 2 blocks).
    sfs3 = jax.random.normal(k5, (2, 4, 64, 64), dtype=jnp.float32)
    mesh3 = jax.random.normal(k6, (2, 4, 64, 64), dtype=jnp.float32)

    loss3, y3 = sfs2mesh_forward(sfs3, mesh3, w=W_INIT, b=B_INIT)
    jax.block_until_ready((loss3, y3))

    ref_loss3, ref_y3 = _reference(sfs3, mesh3, W_INIT, B_INIT)
    assert y3.shape == sfs3.shape
    assert jnp.allclose(y3, ref_y3, atol=1e-5, rtol=1e-5)
    assert jnp.allclose(loss3, ref_loss3, atol=1e-5, rtol=1e-5)

    print("KERNEL_OK")
</pallas_src>

<mosaic_0001>
module attributes {stable_mosaic.version = 11 : i64} {
  func.func @_sfs2mesh_kernel(%arg0: i32, %arg1: memref<8x1024xf32, #tpu.memory_space<vmem>>, %arg2: memref<8x1024xf32, #tpu.memory_space<vmem>>, %arg3: memref<8x1024xf32, #tpu.memory_space<vmem>>, %arg4: memref<1x8x128xf32, #tpu.memory_space<vmem>>) attributes {dimension_semantics = [#tpu.dimension_semantics<parallel>], iteration_bounds = array<i64: 1>, scalar_prefetch = 0 : i64, scratch_operands = 0 : i64, tpu.core_type = #tpu.core_type<tc>, window_params = [{transform_indices = @transform_0, window_bounds = array<i64: 8, 1024>}, {transform_indices = @transform_1, window_bounds = array<i64: 8, 1024>}, {transform_indices = @transform_2, window_bounds = array<i64: 8, 1024>}, {transform_indices = @transform_3, window_bounds = array<i64: 1, 8, 128>}]} {
    %c0 = arith.constant 0 : index
    %c0_0 = arith.constant 0 : index
    %0 = vector.load %arg1[%c0, %c0_0] : memref<8x1024xf32, #tpu.memory_space<vmem>>, vector<8x1024xf32>
    %cst = arith.constant 1.250000e+00 : f32
    %1 = vector.broadcast %cst : f32 to vector<8x1024xf32>
    %2 = arith.mulf %1, %0 : vector<8x1024xf32>
    %cst_1 = arith.constant 1.000000e-01 : f32
    %3 = vector.broadcast %cst_1 : f32 to vector<8x1024xf32>
    %4 = arith.addf %2, %3 : vector<8x1024xf32>
    %c0_2 = arith.constant 0 : index
    %c0_3 = arith.constant 0 : index
    %5 = vector.load %arg3[%c0_2, %c0_3] : memref<8x1024xf32, #tpu.memory_space<vmem>>, vector<8x1024xf32>
    tpu.vector_store %arg3[%c0_2, %c0_3], %4 {strides = array<i32>} : memref<8x1024xf32, #tpu.memory_space<vmem>>, vector<8x1024xf32>,
    %c0_4 = arith.constant 0 : index
    %c0_5 = arith.constant 0 : index
    %6 = vector.load %arg2[%c0_4, %c0_5] : memref<8x1024xf32, #tpu.memory_space<vmem>>, vector<8x1024xf32>
    %7 = arith.subf %4, %6 : vector<8x1024xf32>
    %8 = arith.mulf %7, %7 : vector<8x1024xf32>
    %9 = vector.shape_cast %8 : vector<8x1024xf32> to vector<1x8x1024xf32>
    %cst_6 = arith.constant dense<0.000000e+00> : vector<8x1024xf32>
    %10 = vector.multi_reduction <add>, %9, %cst_6 [0] : vector<1x8x1024xf32> to vector<8x1024xf32>
    %11 = vector.extract_strided_slice %10 {offsets = [0, 0], sizes = [8, 128], strides = [1, 1]} : vector<8x1024xf32> to vector<8x128xf32>
    %12 = vector.extract_strided_slice %10 {offsets = [0, 128], sizes = [8, 128], strides = [1, 1]} : vector<8x1024xf32> to vector<8x128xf32>
    %13 = arith.addf %11, %12 : vector<8x128xf32>
    %14 = vector.extract_strided_slice %10 {offsets = [0, 256], sizes = [8, 128], strides = [1, 1]} : vector<8x1024xf32> to vector<8x128xf32>
    %15 = arith.addf %13, %14 : vector<8x128xf32>
    %16 = vector.extract_strided_slice %10 {offsets = [0, 384], sizes = [8, 128], strides = [1, 1]} : vector<8x1024xf32> to vector<8x128xf32>
    %17 = arith.addf %15, %16 : vector<8x128xf32>
    %18 = vector.extract_strided_slice %10 {offsets = [0, 512], sizes = [8, 128], strides = [1, 1]} : vector<8x1024xf32> to vector<8x128xf32>
    %19 = arith.addf %17, %18 : vector<8x128xf32>
    %20 = vector.extract_strided_slice %10 {offsets = [0, 640], sizes = [8, 128], strides = [1, 1]} : vector<8x1024xf32> to vector<8x128xf32>
    %21 = arith.addf %19, %20 : vector<8x128xf32>
    %22 = vector.extract_strided_slice %10 {offsets = [0, 768], sizes = [8, 128], strides = [1, 1]} : vector<8x1024xf32> to vector<8x128xf32>
    %23 = arith.addf %21, %22 : vector<8x128xf32>
    %24 = vector.extract_strided_slice %10 {offsets = [0, 896], sizes = [8, 128], strides = [1, 1]} : vector<8x1024xf32> to vector<8x128xf32>
    %25 = arith.addf %23, %24 : vector<8x128xf32>
    %26 = vector.shape_cast %25 : vector<8x128xf32> to vector<1x8x128xf32>
    %c0_7 = arith.constant 0 : index
    %c0_8 = arith.constant 0 : index
    %c0_9 = arith.constant 0 : index
    %27 = vector.load %arg4[%c0_7, %c0_8, %c0_9] : memref<1x8x128xf32, #tpu.memory_space<vmem>>, vector<1x8x128xf32>
    tpu.vector_store %arg4[%c0_7, %c0_8, %c0_9], %26 {strides = array<i32>} : memref<1x8x128xf32, #tpu.memory_space<vmem>>, vector<1x8x128xf32>,
    return
  }
  func.func @transform_0(%arg0: i32) -> (i32, i32) {
    %c0_i32 = arith.constant 0 : i32
    %c0_i32_0 = arith.constant 0 : i32
    return %arg0, %c0_i32 : i32, i32
  }
  func.func @transform_1(%arg0: i32) -> (i32, i32) {
    %c0_i32 = arith.constant 0 : i32
    %c0_i32_0 = arith.constant 0 : i32
    return %arg0, %c0_i32 : i32, i32
  }
  func.func @transform_2(%arg0: i32) -> (i32, i32) {
    %c0_i32 = arith.constant 0 : i32
    %c0_i32_0 = arith.constant 0 : i32
    return %arg0, %c0_i32 : i32, i32
  }
  func.func @transform_3(%arg0: i32) -> (i32, i32, i32) {
    %c0_i32 = arith.constant 0 : i32
    %c0_i32_0 = arith.constant 0 : i32
    %c0_i32_1 = arith.constant 0 : i32
    return %arg0, %c0_i32, %c0_i32_0 : i32, i32, i32
  }
}

</mosaic_0001>

<bundles_post_ra>
// kernel: tpu_custom_call.1
= control target key start
LH: loop header
LB: loop body
LE: loop exit
PB: predicated region body
PF: predicated region fallthrough
CT: control target
= control target key end

     0   :  { %9 = vsyncpa [#allocation3], 0  ;;  %s313_s0 = inlined_call_operand.hbm [shape: f32[8,1024], index: 0, kind: input, shape index: {}]   ;;  %s314_s1 = inlined_call_operand.hbm [shape: f32[8,1024], index: 1, kind: input, shape index: {}]   ;;  %s315_s2 = inlined_call_operand.hbm [shape: f32[8,1024], index: 2, kind: output, shape index: {0}]   ;;  %s316_s3 = inlined_call_operand.hbm [shape: f32[1,8,128], index: 3, kind: output, shape index: {1}]  }
   0x1   :  { %10 = vsyncpa [#allocation6], 0 }
   0x2   :  { %11 = vsyncpa [#allocation4], 0 }
   0x3   :  { %12 = vsyncpa [#allocation9], 0  ;;  %s241_s12 = smov [#allocation2]   ;;  %s242_s14 = smov [#allocation5]  }
   0x4   :  { %s19_s13 = sshll.u32 %s241_s12, 4  ;;  %s29_s15 = sshll.u32 %s242_s14, 4  ;;  %s20_s13 = int_to_ptr.vmem [resolvable:$true] %s19_s13  ;;  %s30_s15 = int_to_ptr.vmem [resolvable:$true] %s29_s15 }
   0x5   :  { %s145_s18 = scalar_lea.hbm %s313_s0, 1024 }
   0x6   :  { %p146_p0 = scmp.ne.s32.totalorder %s313_s0, %s145_s18  ;;  %p149_p1 = scmp.lt.u32.totalorder %s145_s18, %s313_s0 }
   0x8   :  { %p151_p2 = pnand %p149_p1, %p146_p0 }
   0xa   :  { %154 = shalt.err (!%p151_p2)
}
   0xb   :  { %s155_s23 = scalar_lea.vmem %s20_s13, 1024  ;;  %p160_p4 = scmp.lt.s32.totalorder %s20_s13, %s20_s13 }
   0xc   :  { %p156_p3 = scmp.ne.s32.totalorder %s20_s13, %s155_s23  ;;  %p161_p5 = scmp.lt.s32.totalorder %s155_s23, %s155_s23 }
   0xe   :  { %p162_p6 = por %p161_p5, %p160_p4 }
  0x10   :  { %p163_p7 = pnand %p162_p6, %p156_p3 }
  0x12   :  { %166 = shalt.err (!%p163_p7)
}
  0x13   :  { %22 = dma.hbm_to_vmem [thread:$0]  %s313_s0, 1024, %s20_s13, [#allocation3]  }
  0x14   :  { %s167_s28 = scalar_lea.hbm %s314_s1, 1024 }
  0x15   :  { %p168_p8 = scmp.ne.s32.totalorder %s314_s1, %s167_s28  ;;  %p171_p9 = scmp.lt.u32.totalorder %s167_s28, %s314_s1 }
  0x17   :  { %p173_p10 = pnand %p171_p9, %p168_p8 }
  0x19   :  { %176 = shalt.err (!%p173_p10)
}
  0x1a   :  { %s177_s6 = scalar_lea.vmem %s30_s15, 1024  ;;  %p182_p12 = scmp.lt.s32.totalorder %s30_s15, %s30_s15 }
  0x1b   :  { %p178_p11 = scmp.ne.s32.totalorder %s30_s15, %s177_s6  ;;  %p183_p13 = scmp.lt.s32.totalorder %s177_s6, %s177_s6 }
  0x1d   :  { %p184_p0 = por %p183_p13, %p182_p12 }
  0x1f   :  { %p185_p1 = pnand %p184_p0, %p178_p11 }
  0x21   :  { %188 = shalt.err (!%p185_p1)
}
  0x22   :  { %32 = dma.hbm_to_vmem [thread:$0]  %s314_s1, 1024, %s30_s15, [#allocation6]  }
  0x23   :  { %233 = dma.done.wait [#allocation3], 1024  }
  0x24   :  { %234 = vsyncadd [#allocation3], 4294966272 }
  0x25   :  { %235 = dma.done.wait [#allocation6], 1024  }
  0x26   :  { %236 = vsyncadd [#allocation6], 4294966272  ;;  %v39_v0 = vld [vmem:[#allocation2] sm:$0xff]  ;;  %v40_v1 = vld [vmem:[#allocation2 + $0x8] sm:$0xff]  ;;  %s243_s1 = smov [#allocation7]  }
  0x27   :  { %v47_v2 = vmul.f32 1.25, %v39_v0  ;;  %v71_v3 = vld [vmem:[#allocation5] sm:$0xff]  ;;  %v48_v4 = vmul.f32 1.25, %v40_v1  ;;  %v72_v5 = vld [vmem:[#allocation5 + $0x8] sm:$0xff]  ;;  %v41_v6 = vld [vmem:[#allocation2 + $0x10] sm:$0xff]  ;;  %s117_s8 = sshll.u32 %s243_s1, 4  ;;  %s118_s8 = int_to_ptr.vmem [resolvable:$true] %s117_s8 }
  0x28   :  { %v49_v7 = vmul.f32 1.25, %v41_v6  ;;  %v73_v8 = vld [vmem:[#allocation5 + $0x10] sm:$0xff]  ;;  %v42_v9 = vld [vmem:[#allocation2 + $0x18] sm:$0xff]  ;;  %v43_v10 = vld [vmem:[#allocation2 + $0x20] sm:$0xff]  ;;  %s189_s9 = scalar_lea.vmem %s118_s8, 1024  ;;  %p194_p3 = scmp.lt.s32.totalorder %s118_s8, %s118_s8 }
  0x29   :  { %v55_v11 = vadd.f32 0.1, %v47_v2  ;;  %v56_v12 = vadd.f32 0.1, %v48_v4  ;;  %v50_v13 = vmul.f32 1.25, %v42_v9  ;;  %v51_v14 = vmul.f32 1.25, %v43_v10  ;;  %p190_p2 = scmp.ne.s32.totalorder %s118_s8, %s189_s9  ;;  %p195_p4 = scmp.lt.s32.totalorder %s189_s9, %s189_s9 }
  0x2a   :  { %v57_v15 = vadd.f32 0.1, %v49_v7  ;;  %v74_v16 = vld [vmem:[#allocation5 + $0x18] sm:$0xff]  ;;  %v75_v17 = vld [vmem:[#allocation5 + $0x20] sm:$0xff]  ;;  %v44_v18 = vld [vmem:[#allocation2 + $0x28] sm:$0xff] }
  0x2b   :  { %63 = vst [vmem:[#allocation7] sm:$0xff] %v55_v11  ;;  %v79_v19 = vsub.f32 %v55_v11, %v71_v3  ;;  %64 = vst [vmem:[#allocation7 + $0x8] sm:$0xff] %v56_v12  ;;  %v80_v20 = vsub.f32 %v56_v12, %v72_v5  ;;  %v58_v21 = vadd.f32 0.1, %v50_v13  ;;  %v59_v22 = vadd.f32 0.1, %v51_v14  ;;  %p196_p5 = por %p195_p4, %p194_p3 }
  0x2c   :  { %v45_v23 = vld [vmem:[#allocation2 + $0x30] sm:$0xff]  ;;  %65 = vst [vmem:[#allocation7 + $0x10] sm:$0xff] %v57_v15  ;;  %v81_v24 = vsub.f32 %v57_v15, %v73_v8  ;;  %v52_v25 = vmul.f32 1.25, %v44_v18  ;;  %v46_v27 = vld [vmem:[#allocation2 + $0x38] sm:$0xff]  ;;  %v76_v32 = vld [vmem:[#allocation5 + $0x28] sm:$0xff] }
  0x2d   :  { %v53_v26 = vmul.f32 1.25, %v45_v23  ;;  %v87_v28 = vmul.f32 %v79_v19, %v79_v19  ;;  %v88_v29 = vmul.f32 %v80_v20, %v80_v20  ;;  %66 = vst [vmem:[#allocation7 + $0x18] sm:$0xff] %v58_v21  ;;  %v82_v30 = vsub.f32 %v58_v21, %v74_v16  ;;  %67 = vst [vmem:[#allocation7 + $0x20] sm:$0xff] %v59_v22  ;;  %v77_v36 = vld [vmem:[#allocation5 + $0x30] sm:$0xff]  ;;  %v78_v42 = vld [vmem:[#allocation5 + $0x38] sm:$0xff]  ;;  %p197_p6 = pnand %p196_p5, %p190_p2 }
  0x2e   :  { %v83_v31 = vsub.f32 %v59_v22, %v75_v17  ;;  %v89_v33 = vmul.f32 %v81_v24, %v81_v24  ;;  %v60_v34 = vadd.f32 0.1, %v52_v25  ;;  %v54_v37 = vmul.f32 1.25, %v46_v27 }
  0x2f   :  { %v61_v35 = vadd.f32 0.1, %v53_v26  ;;  %v103_v38 = vadd.f32 %v88_v29, %v87_v28  ;;  %v90_v39 = vmul.f32 %v82_v30, %v82_v30 }
  0x30   :  { %68 = vst [vmem:[#allocation7 + $0x28] sm:$0xff] %v60_v34  ;;  %v84_v40 = vsub.f32 %v60_v34, %v76_v32  ;;  %v62_v41 = vadd.f32 0.1, %v54_v37  ;;  %v91_v44 = vmul.f32 %v83_v31, %v83_v31 }
  0x31   :  { %69 = vst [vmem:[#allocation7 + $0x30] sm:$0xff] %v61_v35  ;;  %v104_v43 = vadd.f32 %v103_v38, %v89_v33  ;;  %v85_v45 = vsub.f32 %v61_v35, %v77_v36 }
  0x32   :  { %70 = vst [vmem:[#allocation7 + $0x38] sm:$0xff] %v62_v41  ;;  %v92_v47 = vmul.f32 %v84_v40, %v84_v40  ;;  %v86_v48 = vsub.f32 %v62_v41, %v78_v42 }
  0x33   :  { %v105_v46 = vadd.f32 %v104_v43, %v90_v39 }
  0x34   :  { %200 = shalt.err (!%p197_p6)
}
  0x35   :  { %s201_s12 = scalar_lea.hbm %s315_s2, 1024 }
  0x36   :  { %p202_p7 = scmp.ne.s32.totalorder %s315_s2, %s201_s12  ;;  %p205_p8 = scmp.lt.u32.totalorder %s201_s12, %s315_s2 }
  0x38   :  { %p207_p9 = pnand %p205_p8, %p202_p7 }
  0x3a   :  { %210 = shalt.err (!%p207_p9)
}
  0x3b   :  { %120 = dma.vmem_to_hbm [thread:$0]  %s118_s8, 1024, %s315_s2, [#allocation4]   ;;  %v106_v49 = vadd.f32 %v105_v46, %v91_v44  ;;  %v93_v50 = vmul.f32 %v85_v45, %v85_v45  ;;  %v94_v51 = vmul.f32 %v86_v48, %v86_v48 }
  0x3c   :  { %s244_s19 = smov [#allocation8]  }
  0x3d   :  { %v107_v52 = vadd.f32 %v106_v49, %v92_v47  ;;  %s127_s20 = sshll.u32 %s244_s19, 4  ;;  %s128_s20 = int_to_ptr.vmem [resolvable:$true] %s127_s20 }
  0x3e   :  { %s211_s21 = scalar_lea.vmem %s128_s20, 128  ;;  %p216_p11 = scmp.lt.s32.totalorder %s128_s20, %s128_s20 }
  0x3f   :  { %v108_v53 = vadd.f32 %v107_v52, %v93_v50  ;;  %p212_p10 = scmp.ne.s32.totalorder %s128_s20, %s211_s21  ;;  %p217_p12 = scmp.lt.s32.totalorder %s211_s21, %s211_s21 }
  0x41   :  { %v109_v54 = vadd.f32 %v108_v53, %v94_v51  ;;  %p218_p13 = por %p217_p12, %p216_p11 }
  0x43   :  { %110 = vst [vmem:[#allocation8] sm:$0xff] %v109_v54  ;;  %p219_p0 = pnand %p218_p13, %p212_p10 }
  0x45   :  { %222 = shalt.err (!%p219_p0)
}
  0x46   :  { %s223_s2 = scalar_lea.hbm %s316_s3, 128 }
  0x47   :  { %p224_p1 = scmp.ne.s32.totalorder %s316_s3, %s223_s2  ;;  %p227_p2 = scmp.lt.u32.totalorder %s223_s2, %s316_s3 }
  0x49   :  { %p229_p3 = pnand %p227_p2, %p224_p1 }
  0x4b   :  { %232 = shalt.err (!%p229_p3)
}
  0x4c   :  { %130 = dma.vmem_to_hbm [thread:$0]  %s128_s20, 128, %s316_s3, [#allocation9]  }
  0x4d   :  { %237 = dma.done.wait [#allocation4], 1024  }
  0x4e   :  { %238 = vsyncadd [#allocation4], 4294966272 }
  0x4f   :  { %239 = dma.done.wait [#allocation9], 128  }
  0x50   :  { %240 = vsyncadd [#allocation9], 4294967168 }
  0x51   :  { %137 = vsyncpa [#allocation3], 1 }
  0x52   :  { %138 = vsyncpa [#allocation6], 1 }
  0x53   :  { %139 = vsyncpa [#allocation4], 1 }
  0x54   :  { %140 = vsyncpa [#allocation9], 1 }

</bundles_post_ra>
